<compile_context>
chip_gen: v5e
topology: v5e:2x2
jax: 0.10.0
libtpu: 0.0.40
codegen_flags: <defaults>
</compile_context>

<pallas_src>
import functools

import jax
import jax.numpy as jnp
from jax import lax
from jax.experimental import pallas as pl
from jax.experimental.pallas import tpu as pltpu


def _round_up(x, m):
    return (x + m - 1) // m * m


def _pad_to(x, shape):
    pads = [(0, s - d) for d, s in zip(x.shape, shape)]
    if any(hi for _, hi in pads):
        return jnp.pad(x, pads)
    return x


# ---------------------------------------------------------------------------
# Generic tiled matmul + bias kernel (grid parallel over M/N tiles, full K).
# ---------------------------------------------------------------------------
def _matmul_bias_kernel(a_ref, b_ref, bias_ref, o_ref):
    acc = jnp.dot(a_ref[...], b_ref[...], preferred_element_type=jnp.float32)
    o_ref[...] = (acc + bias_ref[...]).astype(o_ref.dtype)


def pallas_matmul_bias(a, b, bias, out_dtype=jnp.float32):
    """(M, K) @ (K, N) + (1, N). Operands cast to bf16, f32 accumulation."""
    M, K = a.shape
    Kb, N = b.shape
    assert K == Kb

    a = a.astype(jnp.bfloat16)
    b = b.astype(jnp.bfloat16)
    bias = bias.astype(jnp.float32)

    # M tiling: keep full M when small, else 256-row tiles.
    if M <= 256:
        TM, Mp = M, M
    else:
        TM = 256
        Mp = _round_up(M, TM)
    # N tiling: pad to lane-dense multiple of 128, pick the largest tile dividing Np.
    Np = _round_up(N, 128)
    TN = 128
    for cand in (512, 256, 128):
        if Np % cand == 0:
            TN = cand
            break

    a_p = _pad_to(a, (Mp, K))
    b_p = _pad_to(b, (K, Np))
    bias_p = _pad_to(bias, (1, Np))

    cost = pl.CostEstimate(
        flops=int(2 * Mp * K * Np),
        transcendentals=0,
        bytes_accessed=int(Mp * K * 2 + K * Np * 2 + Mp * Np * 4 + Np * 4),
    )

    out = pl.pallas_call(
        _matmul_bias_kernel,
        out_shape=jax.ShapeDtypeStruct((Mp, Np), out_dtype),
        grid_spec=pltpu.PrefetchScalarGridSpec(
            num_scalar_prefetch=0,
            grid=(Mp // TM, Np // TN),
            in_specs=[
                pl.BlockSpec((TM, K), lambda i, j: (i, 0)),
                pl.BlockSpec((K, TN), lambda i, j: (0, j)),
                pl.BlockSpec((1, TN), lambda i, j: (0, j)),
            ],
            out_specs=pl.BlockSpec((TM, TN), lambda i, j: (i, j)),
        ),
        compiler_params=pltpu.CompilerParams(
            dimension_semantics=("parallel", "parallel")),
        cost_estimate=cost,
    )(a_p, b_p, bias_p)

    return out[:M, :N]


# ---------------------------------------------------------------------------
# Sequential GRU recurrence kernel (chunked over time).
# ---------------------------------------------------------------------------
def _gru_seq_kernel(gi_ref, h0_ref, whh_ref, bhn_ref, hs_ref, hfin_ref,
                    h_scratch, *, hidden_dim, chunk, seq_len):
    i = pl.program_id(0)

    @pl.when(i == 0)
    def _():
        h_scratch[...] = h0_ref[...]

    H = hidden_dim
    whh = whh_ref[...]          # (H, 3H) bf16, gate order (r, z, n)
    b_hn = bhn_ref[...]         # (1, H)  f32

    def step(s, h):
        gi = gi_ref[s]          # (B, 3H) f32; b_ih (+ b_hh for r, z) pre-folded
        gh = jnp.dot(h.astype(whh.dtype), whh,
                     preferred_element_type=jnp.float32)          # (B, 3H)
        r = jax.nn.sigmoid(gi[:, 0:H] + gh[:, 0:H])
        z = jax.nn.sigmoid(gi[:, H:2 * H] + gh[:, H:2 * H])
        n = jnp.tanh(gi[:, 2 * H:3 * H] + r * (gh[:, 2 * H:3 * H] + b_hn))
        h_new = (1.0 - z) * n + z * h
        # Mask updates on padded tail timesteps so the final hidden is exact.
        valid = (i * chunk + s) < seq_len
        h_new = jnp.where(valid, h_new, h)
        hs_ref[s] = h_new.astype(hs_ref.dtype)
        return h_new

    h_final = lax.fori_loop(0, chunk, step, h_scratch[...], unroll=True)
    h_scratch[...] = h_final

    @pl.when(i == pl.num_programs(0) - 1)
    def _():
        hfin_ref[...] = h_final.astype(hfin_ref.dtype)


# ---------------------------------------------------------------------------
# Forward pass matching PyTorch QuestionEncoder.forward
# ---------------------------------------------------------------------------
def question_encoder_forward(question_seqs, params, question_length=None,
                             hidden=None, time_chunk=16):
    """question_seqs: (B, T) int32 token ids. Returns (output, hidden) matching
    PyTorch: output (B, T, vocab_size), hidden (1, B, hidden_dim)."""
    del question_length  # unused in the reference forward (no packing)

    emb_w = params["embedding"]          # (V, E)
    wih = params["w_ih"]                 # (E, 3H)  (already transposed)
    whh = params["w_hh"]                 # (H, 3H)
    bih = params["b_ih"]                 # (1, 3H)
    bhh = params["b_hh"]                 # (1, 3H)
    wout = params["w_out"]               # (H, V)
    bout = params["b_out"]               # (1, V)

    B, T = question_seqs.shape
    V, E = emb_w.shape
    H = whh.shape[0]

    # Glue: embedding gather, time-major layout.
    embs_tbe = jnp.take(emb_w, question_seqs.T, axis=0)              # (T, B, E)

    # ---- stage 1: input projection for all timesteps (one big matmul) ----
    # Fold b_ih fully and b_hh for r/z gates; keep b_hn separate because of
    # the r * (W_hn h + b_hn) term in the n gate.
    gi_bias = jnp.concatenate(
        [bih[:, :2 * H] + bhh[:, :2 * H], bih[:, 2 * H:]], axis=1)   # (1, 3H)
    b_hn = bhh[:, 2 * H:].astype(jnp.float32)                        # (1, H)

    gi = pallas_matmul_bias(embs_tbe.reshape(T * B, E), wih, gi_bias,
                            out_dtype=jnp.float32)                   # (T*B, 3H)
    gi = gi.reshape(T, B, 3 * H)

    # ---- stage 2: sequential GRU recurrence, chunked over time ------------
    TT = min(time_chunk, T)
    Tp = _round_up(T, TT)
    gi = _pad_to(gi, (Tp, B, 3 * H))

    if hidden is None:
        h0 = jnp.zeros((B, H), jnp.float32)
    else:
        h0 = hidden.reshape(B, H).astype(jnp.float32)

    whh_bf = whh.astype(jnp.bfloat16)

    kernel = functools.partial(_gru_seq_kernel, hidden_dim=H, chunk=TT,
                               seq_len=T)

    cost = pl.CostEstimate(
        flops=int(2 * Tp * B * H * 3 * H + 12 * Tp * B * H),
        transcendentals=int(3 * Tp * B * H),
        bytes_accessed=int(Tp * B * 3 * H * 4 + Tp * B * H * 4
                           + H * 3 * H * 2 + 3 * B * H * 4),
    )

    hs, h_fin = pl.pallas_call(
        kernel,
        out_shape=(
            jax.ShapeDtypeStruct((Tp, B, H), jnp.float32),
            jax.ShapeDtypeStruct((B, H), jnp.float32),
        ),
        grid_spec=pltpu.PrefetchScalarGridSpec(
            num_scalar_prefetch=0,
            grid=(Tp // TT,),
            in_specs=[
                pl.BlockSpec((TT, B, 3 * H), lambda i: (i, 0, 0)),   # gi chunk
                pl.BlockSpec((B, H), lambda i: (0, 0)),              # h0
                pl.BlockSpec((H, 3 * H), lambda i: (0, 0)),          # W_hh^T (bf16)
                pl.BlockSpec((1, H), lambda i: (0, 0)),              # b_hn
            ],
            out_specs=[
                pl.BlockSpec((TT, B, H), lambda i: (i, 0, 0)),       # hidden states
                pl.BlockSpec((B, H), lambda i: (0, 0)),              # final hidden
            ],
            scratch_shapes=[pltpu.VMEM((B, H), jnp.float32)],
        ),
        compiler_params=pltpu.CompilerParams(
            dimension_semantics=("arbitrary",)),
        cost_estimate=cost,
    )(gi, h0, whh_bf, b_hn)

    # ---- stage 3: output projection hoisted out, one big parallel matmul --
    hs_bth = jnp.transpose(hs[:T], (1, 0, 2)).reshape(B * T, H)      # (B*T, H)
    logits = pallas_matmul_bias(hs_bth, wout, bout,
                                out_dtype=jnp.float32)               # (B*T, V)
    output = logits.reshape(B, T, V)                                 # (B, T, V)
    hidden_out = h_fin[None, :, :]                                   # (1, B, H)
    return output, hidden_out


def init_params(key, vocab_size, embed_dim, hidden_dim):
    ks = jax.random.split(key, 7)
    s_gru = 1.0 / jnp.sqrt(hidden_dim)
    s_lin = 1.0 / jnp.sqrt(hidden_dim)
    return {
        # nn.Embedding: N(0, 1)
        "embedding": jax.random.normal(ks[0], (vocab_size, embed_dim), jnp.float32),
        # nn.GRU weights, stored transposed for x @ W^T layout; gate order (r,z,n)
        "w_ih": jax.random.uniform(ks[1], (embed_dim, 3 * hidden_dim), jnp.float32,
                                   -s_gru, s_gru),
        "w_hh": jax.random.uniform(ks[2], (hidden_dim, 3 * hidden_dim), jnp.float32,
                                   -s_gru, s_gru),
        "b_ih": jax.random.uniform(ks[3], (1, 3 * hidden_dim), jnp.float32,
                                   -s_gru, s_gru),
        "b_hh": jax.random.uniform(ks[4], (1, 3 * hidden_dim), jnp.float32,
                                   -s_gru, s_gru),
        # nn.Linear(hidden_dim, vocab_size), stored transposed (H, V)
        "w_out": jax.random.uniform(ks[5], (hidden_dim, vocab_size), jnp.float32,
                                    -s_lin, s_lin),
        "b_out": jax.random.uniform(ks[6], (1, vocab_size), jnp.float32,
                                    -s_lin, s_lin),
    }


if __name__ == "__main__":
    vocab_size, embed_dim, hidden_dim = 32, 16, 32
    batch, seq = 2, 8

    key = jax.random.PRNGKey(0)
    k_param, k_seq = jax.random.split(key)
    params = init_params(k_param, vocab_size, embed_dim, hidden_dim)
    question_seqs = jax.random.randint(k_seq, (batch, seq), 0, vocab_size,
                                       dtype=jnp.int32)
    # question_length is unused in the reference forward (no packing).

    output, hidden = question_encoder_forward(question_seqs, params, hidden=None)
    jax.block_until_ready((output, hidden))

    assert output.shape == (batch, seq, vocab_size)
    assert hidden.shape == (1, batch, hidden_dim)
    print("KERNEL_OK")
</pallas_src>

<mosaic_0001>
module attributes {stable_mosaic.version = 11 : i64} {
  func.func @_matmul_bias_kernel(%arg0: i32, %arg1: i32, %arg2: memref<16x16xbf16, #tpu.memory_space<vmem>>, %arg3: memref<16x128xbf16, #tpu.memory_space<vmem>>, %arg4: memref<1x128xf32, #tpu.memory_space<vmem>>, %arg5: memref<16x128xf32, #tpu.memory_space<vmem>>) attributes {dimension_semantics = [#tpu.dimension_semantics<parallel>, #tpu.dimension_semantics<parallel>], iteration_bounds = array<i64: 1, 1>, scalar_prefetch = 0 : i64, scratch_operands = 0 : i64, tpu.core_type = #tpu.core_type<tc>, window_params = [{transform_indices = @transform_0, window_bounds = array<i64: 16, 16>}, {transform_indices = @transform_1, window_bounds = array<i64: 16, 128>}, {transform_indices = @transform_2, window_bounds = array<i64: 1, 128>}, {transform_indices = @transform_3, window_bounds = array<i64: 16, 128>}]} {
    %c0 = arith.constant 0 : index
    %c0_0 = arith.constant 0 : index
    %0 = vector.load %arg2[%c0, %c0_0] : memref<16x16xbf16, #tpu.memory_space<vmem>>, vector<16x16xbf16>
    %c0_1 = arith.constant 0 : index
    %c0_2 = arith.constant 0 : index
    %1 = vector.load %arg3[%c0_1, %c0_2] : memref<16x128xbf16, #tpu.memory_space<vmem>>, vector<16x128xbf16>
    %cst = arith.constant dense<0.000000e+00> : vector<16x128xf32>
    %2 = tpu.matmul %0, %1, %cst {dimension_numbers = #tpu.dot_dimension_numbers<[1], [0], [0], [1], [0, 0, 1, 1], [], []>} : vector<16x16xbf16>, vector<16x128xbf16>, vector<16x128xf32> -> vector<16x128xf32>
    %c0_3 = arith.constant 0 : index
    %c0_4 = arith.constant 0 : index
    %3 = vector.load %arg4[%c0_3, %c0_4] : memref<1x128xf32, #tpu.memory_space<vmem>>, vector<1x128xf32>
    %4 = vector.broadcast %3 : vector<1x128xf32> to vector<16x128xf32>
    %5 = arith.addf %2, %4 : vector<16x128xf32>
    %c0_5 = arith.constant 0 : index
    %c0_6 = arith.constant 0 : index
    %6 = vector.load %arg5[%c0_5, %c0_6] : memref<16x128xf32, #tpu.memory_space<vmem>>, vector<16x128xf32>
    tpu.vector_store %arg5[%c0_5, %c0_6], %5 {strides = array<i32>} : memref<16x128xf32, #tpu.memory_space<vmem>>, vector<16x128xf32>,
    return
  }
  func.func @transform_0(%arg0: i32, %arg1: i32) -> (i32, i32) {
    %c0_i32 = arith.constant 0 : i32
    %c0_i32_0 = arith.constant 0 : i32
    return %arg0, %c0_i32 : i32, i32
  }
  func.func @transform_1(%arg0: i32, %arg1: i32) -> (i32, i32) {
    %c0_i32 = arith.constant 0 : i32
    %c0_i32_0 = arith.constant 0 : i32
    return %c0_i32, %arg1 : i32, i32
  }
  func.func @transform_2(%arg0: i32, %arg1: i32) -> (i32, i32) {
    %c0_i32 = arith.constant 0 : i32
    %c0_i32_0 = arith.constant 0 : i32
    return %c0_i32, %arg1 : i32, i32
  }
  func.func @transform_3(%arg0: i32, %arg1: i32) -> (i32, i32) {
    %c0_i32 = arith.constant 0 : i32
    return %arg0, %arg1 : i32, i32
  }
}

</mosaic_0001>

<bundles_post_ra>
// kernel: tpu_custom_call.1
= control target key start
LH: loop header
LB: loop body
LE: loop exit
PB: predicated region body
PF: predicated region fallthrough
CT: control target
= control target key end

     0   :  { %8 = vsyncpa [#allocation3], 0  ;;  %s243_s0 = inlined_call_operand.hbm [shape: bf16[16,16], index: 0, kind: input, shape index: {}]   ;;  %s244_s1 = inlined_call_operand.hbm [shape: bf16[16,128], index: 1, kind: input, shape index: {}]   ;;  %s245_s2 = inlined_call_operand.vmem [shape: f32[1,128], index: 2, kind: input, shape index: {}]   ;;  %s246_s3 = inlined_call_operand.hbm [shape: f32[16,128], index: 3, kind: output, shape index: {}]  }
   0x1   :  { %9 = vsyncpa [#allocation6], 0 }
   0x2   :  { %10 = vsyncpa [#allocation4], 0  ;;  %s15_s14 = sshll.u32 %s243_s0, 4  ;;  %s204_s15 = smov [#allocation2]   ;;  %s16_s14 = int_to_ptr.hbm [resolvable:$true] %s15_s14 }
   0x3   :  { %s17_s16 = sshll.u32 %s204_s15, 4  ;;  %s28_s19 = sshll.u32 %s244_s1, 4  ;;  %s18_s16 = int_to_ptr.vmem [resolvable:$true] %s17_s16  ;;  %s29_s19 = int_to_ptr.hbm [resolvable:$true] %s28_s19 }
   0x4   :  { %s205_s20 = smov 64   ;;  %s206_s21 = smov 4  }
   0x5   :  { %23 = dma.hbm_to_vmem [thread:$0]  %s16_s14, 128, %s18_s16, [#allocation3], %s205_s20, %s205_s20, %s206_s21  }
   0x6   :  { %s207_s22 = smov [#allocation5]  }
   0x7   :  { %s30_s23 = sshll.u32 %s207_s22, 4  ;;  %s31_s23 = int_to_ptr.vmem [resolvable:$true] %s30_s23 }
   0x8   :  { %36 = dma.hbm_to_vmem [thread:$0]  %s29_s19, 128, %s31_s23, [#allocation6], %s205_s20, %s205_s20, %s206_s21  }
   0x9   :  { %198 = dma.done.wait [#allocation3], 128  }
   0xa   :  { %199 = vsyncadd [#allocation3], 4294967168 }
   0xb   :  { %200 = dma.done.wait [#allocation6], 128  }
   0xc   :  { %201 = vsyncadd [#allocation6], 4294967168  ;;  %v117_v0 = vld [vmem:[#allocation5] sm:$0xff]  ;;  %v116_v1 = vld [vmem:[#allocation2] sm:$0xff]  ;;  %vm67_vm0 = vcmask 130048   ;;  %s208_s1 = smov [#allocation7]  }
   0xd   :  { %78 = vmatpush.bf16.msra.mxu0 %v117_v0  ;;  %v125_v2 = vld [vmem:[%s245_s2] ss:$0 sm:$0xff]  ;;  %s91_s25 = sshll.u32 %s208_s1, 4  ;;  %s93_s28 = sshll.u32 %s246_s3, 4  ;;  %s92_s25 = int_to_ptr.vmem [resolvable:$true] %s91_s25  ;;  %s94_s28 = int_to_ptr.hbm [resolvable:$true] %s93_s28 }
   0xe   :  { %s209_s29 = smov 128   ;;  %s210_s30 = smov 8  }
  0x10   :  { %115 = vmatmul.msk.bf16.vlgmr.msra.gmra.mxu0 %vm67_vm0, %v116_v1 }
  0x8d   :  { %v80_v3 = vpop.f32.mrf.mxu0 }
  0x8e   :  { %v81_v4 = vadd.f32 %v125_v2, %v80_v3 }
  0x90   :  { %85 = vst [vmem:[#allocation7] sm:$0xff] %v81_v4 }
  0x95   :  { %v82_v5 = vpop.f32.mrf.mxu0 }
  0x96   :  { %v83_v6 = vadd.f32 %v125_v2, %v82_v5 }
  0x98   :  { %86 = vst [vmem:[#allocation7 + $0x8] sm:$0xff] %v83_v6 }
  0x99   :  { %99 = dma.vmem_to_hbm [thread:$0]  %s92_s25, 256, %s94_s28, [#allocation4], %s209_s29, %s209_s29, %s210_s30  }
  0x9a   :  { %202 = dma.done.wait [#allocation4], 256  }
  0x9b   :  { %203 = vsyncadd [#allocation4], 4294967040 }
  0x9c   :  { %104 = vsyncpa [#allocation3], 1 }
  0x9d   :  { %105 = vsyncpa [#allocation6], 1 }
  0x9e   :  { %106 = vsyncpa [#allocation4], 1 }

</bundles_post_ra>
